<compile_context>
chip_gen: v6e
topology: v6e:2x2x1
jax: 0.10.0
libtpu: 0.0.40
codegen_flags: <defaults>
</compile_context>

<pallas_src>
import numpy as np
import jax
import jax.numpy as jnp
from jax import lax
from jax.experimental import pallas as pl
from jax.experimental.pallas import tpu as pltpu


def _vmem_limit_bytes():
    """Scoped-VMEM request: chip capacity minus headroom (never the full 64 MiB on v7x)."""
    try:
        cap = int(getattr(pltpu.get_tpu_info(), "vmem_capacity_bytes"))
        return int(min(96 * 2**20, max(cap - 16 * 2**20, 32 * 2**20)))
    except Exception:
        return 48 * 2**20          # conservative: safe on v5e/v6e/v7x


def _max_edge_out_tile(vmem_limit):
    # bigger tiles amortize per-grid-step overhead on 128-MiB chips (v5e/v6e);
    # keep blocks modest where VMEM is small (v7x).
    return 16384 if vmem_limit >= 64 * 2**20 else 8192


# ----------------------------- Pallas kernels ------------------------------

def _edge_branch_kernel(x_ref, w_ref, gamma_ref, beta_ref, o_ref):
    """Fused 1x1 conv (C_in -> 32, no bias) + GroupNorm(4, 32), channel-major out.

    x_ref: (1, HW, C) f32 (cast to bf16 in-kernel for the MXU)
    w_ref: (C, 32) bf16     gamma/beta: (1, 32) f32
    o_ref: (1, 32, HW) bf16  -- lane-dense store (GN math stays f32)
    """
    hw = x_ref.shape[1]
    x = x_ref[0].astype(jnp.bfloat16)                               # (HW, C)
    h = jnp.dot(x, w_ref[...], preferred_element_type=jnp.float32)  # (HW, 32) f32

    # Single-pass GroupNorm stats: per-channel sum and sum-of-squares, then
    # group aggregation on tiny (1, 32) vectors (4 statically unrolled groups).
    eps = 1e-5
    inv_cnt = 1.0 / float(hw * 8)                                   # 8 channels / group
    s = jnp.sum(h, axis=0, keepdims=True)                           # (1, 32)
    ss = jnp.sum(h * h, axis=0, keepdims=True)                      # (1, 32)

    ch = lax.broadcasted_iota(jnp.int32, (1, 32), 1)
    mu = jnp.zeros((1, 32), jnp.float32)
    ex2 = jnp.zeros((1, 32), jnp.float32)
    for g in range(4):
        m = (ch >= g * 8) & (ch < (g + 1) * 8)
        gs = jnp.sum(jnp.where(m, s, 0.0))                          # group sum (scalar)
        gss = jnp.sum(jnp.where(m, ss, 0.0))                        # group sumsq (scalar)
        mu = jnp.where(m, gs * inv_cnt, mu)
        ex2 = jnp.where(m, gss * inv_cnt, ex2)
    var = jnp.maximum(ex2 - mu * mu, 0.0)                           # guard cancellation
    k = lax.rsqrt(var + eps) * gamma_ref[...]                       # (1, 32)
    c = beta_ref[...] - mu * k                                      # (1, 32)

    o = h * k + c                                                   # one VPU pass
    # XLU transpose -> channel-major (32, HW); store is full-lane-width.
    o_ref[0] = jnp.transpose(o).astype(o_ref.dtype)


def _edge_out_kernel(e1_ref, e2_ref, e3_ref, e4_ref, e5_ref, w_ref, b_ref, o_ref):
    """Fused ReLU + 1x1 conv (160 -> 1, bias) + sigmoid, concat-free.

    e*_ref: (1, 32, T) bf16 channel-major    w_ref: (32, 5) f32    b_ref: (1, 1) f32
    o_ref:  (1, 1, T) f32 (lane-dense store)
    """
    w = w_ref[...]                                                  # (32, 5)

    def term(e_ref, g):
        e = jnp.maximum(e_ref[0].astype(jnp.float32), 0.0)          # ReLU, f32 math
        return e * w[:, g:g + 1]                                    # (32, T)

    acc = (term(e1_ref, 0) + term(e2_ref, 1) + term(e3_ref, 2)
           + term(e4_ref, 3) + term(e5_ref, 4))                     # (32, T)
    h = jnp.sum(acc, axis=0, keepdims=True) + b_ref[...]            # (1, T)
    o_ref[0] = 1.0 / (1.0 + jnp.exp(-h))                            # sigmoid


def edge_branch(x_flat, w_bf16, gamma, beta, vmem_limit):
    """x_flat: (N, HW, C) f32 -> (N, 32, HW) bf16 (conv + GroupNorm, channel-major)."""
    N, HW, C = x_flat.shape
    return pl.pallas_call(
        _edge_branch_kernel,
        out_shape=jax.ShapeDtypeStruct((N, 32, HW), jnp.bfloat16),
        grid=(N,),
        in_specs=[
            pl.BlockSpec((1, HW, C), lambda n: (n, 0, 0)),
            pl.BlockSpec((C, 32), lambda n: (0, 0)),
            pl.BlockSpec((1, 32), lambda n: (0, 0)),
            pl.BlockSpec((1, 32), lambda n: (0, 0)),
        ],
        out_specs=pl.BlockSpec((1, 32, HW), lambda n: (n, 0, 0)),
        compiler_params=pltpu.CompilerParams(
            dimension_semantics=("parallel",),
            vmem_limit_bytes=vmem_limit),
    )(x_flat, w_bf16, gamma, beta)


def _pick_tile(hw, max_tile):
    """Spatial tile for edge_out. Returns (tile, padded_hw); tile is always a
    divisor of padded_hw and either the full extent or a >=512 multiple of 128."""
    if hw <= max_tile:
        return hw, hw
    for t in (16384, 8192, 4096, 2048, 1024, 512):
        if t <= max_tile and hw % t == 0:
            return t, hw
    t = 512
    return t, ((hw + t - 1) // t) * t                               # pad, never tiny tiles


def edge_out(edges_cm, w_cm, b, vmem_limit):
    """edges_cm: five (N, 32, HW) bf16 channel-major branch maps -> (N, 1, HW) f32."""
    N, _, HW = edges_cm[0].shape
    T, HWp = _pick_tile(HW, _max_edge_out_tile(vmem_limit))
    if HWp != HW:
        edges_cm = [jnp.pad(e, ((0, 0), (0, 0), (0, HWp - HW))) for e in edges_cm]
    grid = (N, HWp // T)
    in_specs = [pl.BlockSpec((1, 32, T), lambda n, t: (n, 0, t)) for _ in range(5)]
    in_specs += [
        pl.BlockSpec((32, 5), lambda n, t: (0, 0)),
        pl.BlockSpec((1, 1), lambda n, t: (0, 0)),
    ]
    out = pl.pallas_call(
        _edge_out_kernel,
        out_shape=jax.ShapeDtypeStruct((N, 1, HWp), jnp.float32),
        grid=grid,
        in_specs=in_specs,
        out_specs=pl.BlockSpec((1, 1, T), lambda n, t: (n, 0, t)),
        compiler_params=pltpu.CompilerParams(
            dimension_semantics=("parallel", "parallel"),
            vmem_limit_bytes=vmem_limit),
    )(*edges_cm, w_cm, b)
    return out[:, :, :HW] if HWp != HW else out


# ------------------------- Backbone glue (plain JAX) ------------------------

_BN_SCALE = np.float32(1.0 / np.sqrt(1.0 + 1e-5))  # eval-mode BN with default stats


def _bn(x):
    # eval-mode BatchNorm with default (deterministic) parameters:
    # running_mean=0, running_var=1, gamma=1, beta=0  ->  x / sqrt(1 + eps)
    return x * _BN_SCALE


def _conv(x, w, stride, padding):
    return lax.conv_general_dilated(
        x, w, window_strides=(stride, stride),
        padding=[(padding, padding), (padding, padding)],
        dimension_numbers=("NHWC", "HWIO", "NHWC"))


def _maxpool_3x3_s2(x):
    return lax.reduce_window(
        x, -jnp.inf, lax.max,
        window_dimensions=(1, 3, 3, 1),
        window_strides=(1, 2, 2, 1),
        padding=((0, 0), (1, 1), (1, 1), (0, 0)))


def _bottleneck(x, w1, w2, w3, wd, stride):
    out = jax.nn.relu(_bn(_conv(x, w1, 1, 0)))
    out = jax.nn.relu(_bn(_conv(out, w2, stride, 1)))
    out = _bn(_conv(out, w3, 1, 0))
    sc = x if wd is None else _bn(_conv(x, wd, stride, 0))
    return jax.nn.relu(out + sc)


def backbone_forward(x_nhwc, bp):
    # stage1: conv1(7x7,s2) + bn + relu + maxpool(3x3,s2)
    y = _maxpool_3x3_s2(jax.nn.relu(_bn(_conv(x_nhwc, bp["conv1"], 2, 3))))
    x1 = y
    feats = []
    for blocks in bp["layers"]:
        for (w1, w2, w3, wd, s) in blocks:
            y = _bottleneck(y, w1, w2, w3, wd, s)
        feats.append(y)
    x2, x3, x4, x5 = feats
    return x1, x2, x3, x4, x5


# -------------------- Bilinear upsample (align_corners=False) ---------------

def _bilinear_matrix(in_size, scale):
    out_size = in_size * scale
    A = np.zeros((out_size, in_size), np.float32)
    for o in range(out_size):
        src = (o + 0.5) / scale - 0.5
        i0 = int(np.floor(src))
        w1 = src - i0
        lo = min(max(i0, 0), in_size - 1)
        hi = min(max(i0 + 1, 0), in_size - 1)
        A[o, lo] += 1.0 - w1
        A[o, hi] += w1
    return jnp.asarray(A)


def _up_cm(y_cm, h, w, scale, He, We):
    """Channel-major bilinear upsample (align_corners=False) + crop, bf16 out."""
    n = y_cm.shape[0]
    z = y_cm.reshape(n, 32, h, w)
    Ah = _bilinear_matrix(h, scale)
    Aw = _bilinear_matrix(w, scale)
    z = jnp.einsum("oh,nchw->ncow", Ah, z, preferred_element_type=jnp.float32)
    z = jnp.einsum("pw,ncow->ncop", Aw, z, preferred_element_type=jnp.float32)
    z = z[:, :, :He, :We]
    return z.reshape(n, 32, He * We).astype(jnp.bfloat16)


# ------------------------------- Parameters ---------------------------------

class _KeyGen:
    def __init__(self, seed):
        self._key = jax.random.PRNGKey(seed)

    def __call__(self):
        self._key, sub = jax.random.split(self._key)
        return sub


def _conv_w(kg, kh, kw, cin, cout):
    std = np.sqrt(2.0 / (kh * kw * cin)).astype(np.float32)
    return jax.random.normal(kg(), (kh, kw, cin, cout), jnp.float32) * std


def init_params(kg):
    # --- ResNet-50 backbone (strides=[2,2,2,1]) ---
    bp = {"conv1": _conv_w(kg, 7, 7, 3, 64)}
    layers = []
    inplanes = 64
    cfg = [(64, 3, 1), (128, 4, 2), (256, 6, 2), (512, 3, 1)]  # (planes, blocks, stride)
    for planes, blocks, stride in cfg:
        blist = []
        for b in range(blocks):
            s = stride if b == 0 else 1
            w1 = _conv_w(kg, 1, 1, inplanes, planes)
            w2 = _conv_w(kg, 3, 3, planes, planes)
            w3 = _conv_w(kg, 1, 1, planes, planes * 4)
            wd = None
            if s != 1 or inplanes != planes * 4:
                wd = _conv_w(kg, 1, 1, inplanes, planes * 4)
            blist.append((w1, w2, w3, wd, s))
            inplanes = planes * 4
        layers.append(blist)
    bp["layers"] = layers

    # --- edge head (the trainable Boundary-specific parameters) ---
    def edge_w(cin):
        std = np.sqrt(2.0 / cin).astype(np.float32)
        return jax.random.normal(kg(), (cin, 32), jnp.float32) * std

    ep = {}
    for i, cin in enumerate([64, 256, 512, 1024, 2048], start=1):
        ep[f"w{i}"] = edge_w(cin)
        ep[f"g{i}"] = 1.0 + 0.1 * jax.random.normal(kg(), (1, 32), jnp.float32)
        ep[f"b{i}"] = 0.1 * jax.random.normal(kg(), (1, 32), jnp.float32)
    ep["w6"] = jax.random.normal(kg(), (160, 1), jnp.float32) * np.float32(np.sqrt(1.0 / 160))
    ep["b6"] = 0.1 * jax.random.normal(kg(), (1, 1), jnp.float32)
    return {"backbone": bp, "edge": ep}


# ------------------------------- Forward ------------------------------------

def boundary_forward(x_nchw, params):
    x = jnp.transpose(x_nchw, (0, 2, 3, 1)).astype(jnp.float32)  # NCHW -> NHWC
    x1, x2, x3, x4, x5 = backbone_forward(x, params["backbone"])
    e = params["edge"]
    N = x.shape[0]
    He, We = x2.shape[1], x2.shape[2]
    vmem_limit = _vmem_limit_bytes()

    def branch(feat, idx):
        n, h, w, c = feat.shape
        xf = feat.reshape(n, h * w, c)                 # f32; bf16 cast happens in-kernel
        y_cm = edge_branch(xf, e[f"w{idx}"].astype(jnp.bfloat16),
                           e[f"g{idx}"], e[f"b{idx}"], vmem_limit)  # (N, 32, HW) bf16
        return y_cm, h, w

    # TODO(synk): the five branch pallas_calls could be merged (scalar-prefetched
    # weight offsets) but the differing C_in / spatial sizes make block shapes
    # incompatible; kept separate.
    e1_cm, _, _ = branch(x1, 1)
    e2_cm, _, _ = branch(x2, 2)
    e3_cm, h3, w3 = branch(x3, 3)
    e4_cm, h4, w4 = branch(x4, 4)
    e5_cm, h5, w5 = branch(x5, 5)

    edges_cm = [e1_cm, e2_cm,
                _up_cm(e3_cm, h3, w3, 2, He, We),
                _up_cm(e4_cm, h4, w4, 4, He, We),
                _up_cm(e5_cm, h5, w5, 4, He, We)]

    # 160->1 weight as a dense (32, 5) tile: column g = branch g's 32 weights.
    w6_cm = e["w6"].reshape(5, 32).T
    out = edge_out(edges_cm, w6_cm, e["b6"], vmem_limit)           # (N, 1, He*We)
    return out.reshape(N, 1, He, We)                               # NCHW


# --------------------------------- Main --------------------------------------

if __name__ == "__main__":
    kg = _KeyGen(0)
    params = init_params(kg)
    x = jax.random.normal(jax.random.PRNGKey(0), (2, 3, 64, 64), jnp.float32)

    out = boundary_forward(x, params)
    out = jax.block_until_ready(out)

    assert out.shape == (2, 1, 16, 16), out.shape
    assert bool(jnp.all(jnp.isfinite(out)))
    assert bool(jnp.all((out >= 0.0) & (out <= 1.0)))  # sigmoid range
    print("KERNEL_OK")
</pallas_src>

<mosaic_0001>
module attributes {stable_mosaic.version = 11 : i64} {
  func.func @_edge_branch_kernel(%arg0: i32, %arg1: memref<1x256x64xf32, #tpu.memory_space<vmem>>, %arg2: memref<64x32xbf16, #tpu.memory_space<vmem>>, %arg3: memref<1x32xf32, #tpu.memory_space<vmem>>, %arg4: memref<1x32xf32, #tpu.memory_space<vmem>>, %arg5: memref<1x32x256xbf16, #tpu.memory_space<vmem>>) attributes {dimension_semantics = [#tpu.dimension_semantics<parallel>], iteration_bounds = array<i64: 2>, scalar_prefetch = 0 : i64, scratch_operands = 0 : i64, tpu.core_type = #tpu.core_type<tc>, window_params = [{transform_indices = @transform_0, window_bounds = array<i64: 1, 256, 64>}, {pipeline_mode = #tpu.pipeline_mode<synchronous>, transform_indices = @transform_1, window_bounds = array<i64: 64, 32>}, {pipeline_mode = #tpu.pipeline_mode<synchronous>, transform_indices = @transform_2, window_bounds = array<i64: 1, 32>}, {pipeline_mode = #tpu.pipeline_mode<synchronous>, transform_indices = @transform_3, window_bounds = array<i64: 1, 32>}, {transform_indices = @transform_4, window_bounds = array<i64: 1, 32, 256>}]} {
    %c0 = arith.constant 0 : index
    %c0_0 = arith.constant 0 : index
    %c0_1 = arith.constant 0 : index
    %0 = vector.load %arg1[%c0, %c0_0, %c0_1] : memref<1x256x64xf32, #tpu.memory_space<vmem>>, vector<1x256x64xf32>
    %1 = vector.shape_cast %0 : vector<1x256x64xf32> to vector<256x64xf32>
    %2 = arith.truncf %1 : vector<256x64xf32> to vector<256x64xbf16>
    %c0_2 = arith.constant 0 : index
    %c0_3 = arith.constant 0 : index
    %3 = vector.load %arg2[%c0_2, %c0_3] : memref<64x32xbf16, #tpu.memory_space<vmem>>, vector<64x32xbf16>
    %cst = arith.constant dense<0.000000e+00> : vector<256x32xf32>
    %4 = tpu.matmul %2, %3, %cst {dimension_numbers = #tpu.dot_dimension_numbers<[1], [0], [0], [1], [0, 0, 1, 1], [], []>} : vector<256x64xbf16>, vector<64x32xbf16>, vector<256x32xf32> -> vector<256x32xf32>
    %cst_4 = arith.constant dense<0.000000e+00> : vector<32xf32>
    %5 = vector.multi_reduction <add>, %4, %cst_4 [0] : vector<256x32xf32> to vector<32xf32>
    %6 = vector.shape_cast %5 : vector<32xf32> to vector<1x32xf32>
    %7 = arith.mulf %4, %4 : vector<256x32xf32>
    %cst_5 = arith.constant dense<0.000000e+00> : vector<32xf32>
    %8 = vector.multi_reduction <add>, %7, %cst_5 [0] : vector<256x32xf32> to vector<32xf32>
    %9 = vector.shape_cast %8 : vector<32xf32> to vector<1x32xf32>
    %10 = tpu.iota {dimensions = array<i32: 1>} : vector<1x32xi32>
    %cst_6 = arith.constant 0.000000e+00 : f32
    %11 = vector.broadcast %cst_6 : f32 to vector<1x32xf32>
    %cst_7 = arith.constant 0.000000e+00 : f32
    %12 = vector.broadcast %cst_7 : f32 to vector<1x32xf32>
    %c0_i32 = arith.constant 0 : i32
    %13 = vector.broadcast %c0_i32 : i32 to vector<1x32xi32>
    %14 = arith.cmpi sge, %10, %13 : vector<1x32xi32>
    %c8_i32 = arith.constant 8 : i32
    %15 = vector.broadcast %c8_i32 : i32 to vector<1x32xi32>
    %16 = arith.cmpi slt, %10, %15 : vector<1x32xi32>
    %17 = arith.andi %14, %16 : vector<1x32xi1>
    %cst_8 = arith.constant 0.000000e+00 : f32
    %18 = vector.broadcast %cst_8 : f32 to vector<1x32xf32>
    %19 = arith.select %17, %6, %18 : vector<1x32xi1>, vector<1x32xf32>
    %20 = vector.shape_cast %19 : vector<1x32xf32> to vector<1x1x32xf32>
    %cst_9 = arith.constant dense<0.000000e+00> : vector<1xf32>
    %21 = vector.multi_reduction <add>, %20, %cst_9 [1, 2] : vector<1x1x32xf32> to vector<1xf32>
    %22 = vector.shape_cast %21 : vector<1xf32> to vector<1x1x1xf32>
    %23 = vector.extract %22[0, 0, 0] : f32 from vector<1x1x1xf32>
    %cst_10 = arith.constant 0.000000e+00 : f32
    %24 = vector.broadcast %cst_10 : f32 to vector<1x32xf32>
    %25 = arith.select %17, %9, %24 : vector<1x32xi1>, vector<1x32xf32>
    %26 = vector.shape_cast %25 : vector<1x32xf32> to vector<1x1x32xf32>
    %cst_11 = arith.constant dense<0.000000e+00> : vector<1xf32>
    %27 = vector.multi_reduction <add>, %26, %cst_11 [1, 2] : vector<1x1x32xf32> to vector<1xf32>
    %28 = vector.shape_cast %27 : vector<1xf32> to vector<1x1x1xf32>
    %29 = vector.extract %28[0, 0, 0] : f32 from vector<1x1x1xf32>
    %cst_12 = arith.constant 4.8828125E-4 : f32
    %30 = arith.mulf %23, %cst_12 : f32
    %31 = vector.broadcast %30 : f32 to vector<1x32xf32>
    %32 = arith.select %17, %31, %11 : vector<1x32xi1>, vector<1x32xf32>
    %cst_13 = arith.constant 4.8828125E-4 : f32
    %33 = arith.mulf %29, %cst_13 : f32
    %34 = vector.broadcast %33 : f32 to vector<1x32xf32>
    %35 = arith.select %17, %34, %12 : vector<1x32xi1>, vector<1x32xf32>
    %c8_i32_14 = arith.constant 8 : i32
    %36 = vector.broadcast %c8_i32_14 : i32 to vector<1x32xi32>
    %37 = arith.cmpi sge, %10, %36 : vector<1x32xi32>
    %c16_i32 = arith.constant 16 : i32
    %38 = vector.broadcast %c16_i32 : i32 to vector<1x32xi32>
    %39 = arith.cmpi slt, %10, %38 : vector<1x32xi32>
    %40 = arith.andi %37, %39 : vector<1x32xi1>
    %cst_15 = arith.constant 0.000000e+00 : f32
    %41 = vector.broadcast %cst_15 : f32 to vector<1x32xf32>
    %42 = arith.select %40, %6, %41 : vector<1x32xi1>, vector<1x32xf32>
    %43 = vector.shape_cast %42 : vector<1x32xf32> to vector<1x1x32xf32>
    %cst_16 = arith.constant dense<0.000000e+00> : vector<1xf32>
    %44 = vector.multi_reduction <add>, %43, %cst_16 [1, 2] : vector<1x1x32xf32> to vector<1xf32>
    %45 = vector.shape_cast %44 : vector<1xf32> to vector<1x1x1xf32>
    %46 = vector.extract %45[0, 0, 0] : f32 from vector<1x1x1xf32>
    %cst_17 = arith.constant 0.000000e+00 : f32
    %47 = vector.broadcast %cst_17 : f32 to vector<1x32xf32>
    %48 = arith.select %40, %9, %47 : vector<1x32xi1>, vector<1x32xf32>
    %49 = vector.shape_cast %48 : vector<1x32xf32> to vector<1x1x32xf32>
    %cst_18 = arith.constant dense<0.000000e+00> : vector<1xf32>
    %50 = vector.multi_reduction <add>, %49, %cst_18 [1, 2] : vector<1x1x32xf32> to vector<1xf32>
    %51 = vector.shape_cast %50 : vector<1xf32> to vector<1x1x1xf32>
    %52 = vector.extract %51[0, 0, 0] : f32 from vector<1x1x1xf32>
    %cst_19 = arith.constant 4.8828125E-4 : f32
    %53 = arith.mulf %46, %cst_19 : f32
    %54 = vector.broadcast %53 : f32 to vector<1x32xf32>
    %55 = arith.select %40, %54, %32 : vector<1x32xi1>, vector<1x32xf32>
    %cst_20 = arith.constant 4.8828125E-4 : f32
    %56 = arith.mulf %52, %cst_20 : f32
    %57 = vector.broadcast %56 : f32 to vector<1x32xf32>
    %58 = arith.select %40, %57, %35 : vector<1x32xi1>, vector<1x32xf32>
    %c16_i32_21 = arith.constant 16 : i32
    %59 = vector.broadcast %c16_i32_21 : i32 to vector<1x32xi32>
    %60 = arith.cmpi sge, %10, %59 : vector<1x32xi32>
    %c24_i32 = arith.constant 24 : i32
    %61 = vector.broadcast %c24_i32 : i32 to vector<1x32xi32>
    %62 = arith.cmpi slt, %10, %61 : vector<1x32xi32>
    %63 = arith.andi %60, %62 : vector<1x32xi1>
    %cst_22 = arith.constant 0.000000e+00 : f32
    %64 = vector.broadcast %cst_22 : f32 to vector<1x32xf32>
    %65 = arith.select %63, %6, %64 : vector<1x32xi1>, vector<1x32xf32>
    %66 = vector.shape_cast %65 : vector<1x32xf32> to vector<1x1x32xf32>
    %cst_23 = arith.constant dense<0.000000e+00> : vector<1xf32>
    %67 = vector.multi_reduction <add>, %66, %cst_23 [1, 2] : vector<1x1x32xf32> to vector<1xf32>
    %68 = vector.shape_cast %67 : vector<1xf32> to vector<1x1x1xf32>
    %69 = vector.extract %68[0, 0, 0] : f32 from vector<1x1x1xf32>
    %cst_24 = arith.constant 0.000000e+00 : f32
    %70 = vector.broadcast %cst_24 : f32 to vector<1x32xf32>
    %71 = arith.select %63, %9, %70 : vector<1x32xi1>, vector<1x32xf32>
    %72 = vector.shape_cast %71 : vector<1x32xf32> to vector<1x1x32xf32>
    %cst_25 = arith.constant dense<0.000000e+00> : vector<1xf32>
    %73 = vector.multi_reduction <add>, %72, %cst_25 [1, 2] : vector<1x1x32xf32> to vector<1xf32>
    %74 = vector.shape_cast %73 : vector<1xf32> to vector<1x1x1xf32>
    %75 = vector.extract %74[0, 0, 0] : f32 from vector<1x1x1xf32>
    %cst_26 = arith.constant 4.8828125E-4 : f32
    %76 = arith.mulf %69, %cst_26 : f32
    %77 = vector.broadcast %76 : f32 to vector<1x32xf32>
    %78 = arith.select %63, %77, %55 : vector<1x32xi1>, vector<1x32xf32>
    %cst_27 = arith.constant 4.8828125E-4 : f32
    %79 = arith.mulf %75, %cst_27 : f32
    %80 = vector.broadcast %79 : f32 to vector<1x32xf32>
    %81 = arith.select %63, %80, %58 : vector<1x32xi1>, vector<1x32xf32>
    %c24_i32_28 = arith.constant 24 : i32
    %82 = vector.broadcast %c24_i32_28 : i32 to vector<1x32xi32>
    %83 = arith.cmpi sge, %10, %82 : vector<1x32xi32>
    %c32_i32 = arith.constant 32 : i32
    %84 = vector.broadcast %c32_i32 : i32 to vector<1x32xi32>
    %85 = arith.cmpi slt, %10, %84 : vector<1x32xi32>
    %86 = arith.andi %83, %85 : vector<1x32xi1>
    %cst_29 = arith.constant 0.000000e+00 : f32
    %87 = vector.broadcast %cst_29 : f32 to vector<1x32xf32>
    %88 = arith.select %86, %6, %87 : vector<1x32xi1>, vector<1x32xf32>
    %89 = vector.shape_cast %88 : vector<1x32xf32> to vector<1x1x32xf32>
    %cst_30 = arith.constant dense<0.000000e+00> : vector<1xf32>
    %90 = vector.multi_reduction <add>, %89, %cst_30 [1, 2] : vector<1x1x32xf32> to vector<1xf32>
    %91 = vector.shape_cast %90 : vector<1xf32> to vector<1x1x1xf32>
    %92 = vector.extract %91[0, 0, 0] : f32 from vector<1x1x1xf32>
    %cst_31 = arith.constant 0.000000e+00 : f32
    %93 = vector.broadcast %cst_31 : f32 to vector<1x32xf32>
    %94 = arith.select %86, %9, %93 : vector<1x32xi1>, vector<1x32xf32>
    %95 = vector.shape_cast %94 : vector<1x32xf32> to vector<1x1x32xf32>
    %cst_32 = arith.constant dense<0.000000e+00> : vector<1xf32>
    %96 = vector.multi_reduction <add>, %95, %cst_32 [1, 2] : vector<1x1x32xf32> to vector<1xf32>
    %97 = vector.shape_cast %96 : vector<1xf32> to vector<1x1x1xf32>
    %98 = vector.extract %97[0, 0, 0] : f32 from vector<1x1x1xf32>
    %cst_33 = arith.constant 4.8828125E-4 : f32
    %99 = arith.mulf %92, %cst_33 : f32
    %100 = vector.broadcast %99 : f32 to vector<1x32xf32>
    %101 = arith.select %86, %100, %78 : vector<1x32xi1>, vector<1x32xf32>
    %cst_34 = arith.constant 4.8828125E-4 : f32
    %102 = arith.mulf %98, %cst_34 : f32
    %103 = vector.broadcast %102 : f32 to vector<1x32xf32>
    %104 = arith.select %86, %103, %81 : vector<1x32xi1>, vector<1x32xf32>
    %105 = arith.mulf %101, %101 : vector<1x32xf32>
    %106 = arith.subf %104, %105 : vector<1x32xf32>
    %cst_35 = arith.constant 0.000000e+00 : f32
    %107 = vector.broadcast %cst_35 : f32 to vector<1x32xf32>
    %108 = arith.maximumf %106, %107 : vector<1x32xf32>
    %cst_36 = arith.constant 9.99999974E-6 : f32
    %109 = vector.broadcast %cst_36 : f32 to vector<1x32xf32>
    %110 = arith.addf %108, %109 : vector<1x32xf32>
    %111 = math.rsqrt %110 : vector<1x32xf32>
    %c0_37 = arith.constant 0 : index
    %c0_38 = arith.constant 0 : index
    %112 = vector.load %arg3[%c0_37, %c0_38] : memref<1x32xf32, #tpu.memory_space<vmem>>, vector<1x32xf32>
    %113 = arith.mulf %111, %112 : vector<1x32xf32>
    %c0_39 = arith.constant 0 : index
    %c0_40 = arith.constant 0 : index
    %114 = vector.load %arg4[%c0_39, %c0_40] : memref<1x32xf32, #tpu.memory_space<vmem>>, vector<1x32xf32>
    %115 = arith.mulf %101, %113 : vector<1x32xf32>
    %116 = arith.subf %114, %115 : vector<1x32xf32>
    %117 = vector.broadcast %113 : vector<1x32xf32> to vector<256x32xf32>
    %118 = arith.mulf %4, %117 : vector<256x32xf32>
    %119 = vector.broadcast %116 : vector<1x32xf32> to vector<256x32xf32>
    %120 = arith.addf %118, %119 : vector<256x32xf32>
    %121 = tpu.transpose %120, [1, 0] : vector<256x32xf32> -> vector<32x256xf32>
    %122 = arith.truncf %121 : vector<32x256xf32> to vector<32x256xbf16>
    %c0_41 = arith.constant 0 : index
    %c0_42 = arith.constant 0 : index
    %c0_43 = arith.constant 0 : index
    %123 = vector.load %arg5[%c0_41, %c0_42, %c0_43] : memref<1x32x256xbf16, #tpu.memory_space<vmem>>, vector<1x32x256xbf16>
    %124 = vector.shape_cast %123 : vector<1x32x256xbf16> to vector<32x256xbf16>
    %125 = vector.shape_cast %122 : vector<32x256xbf16> to vector<1x32x256xbf16>
    tpu.vector_store %arg5[%c0_41, %c0_42, %c0_43], %125 {strides = array<i32>} : memref<1x32x256xbf16, #tpu.memory_space<vmem>>, vector<1x32x256xbf16>,
    return
  }
  func.func @transform_0(%arg0: i32) -> (i32, i32, i32) {
    %c0_i32 = arith.constant 0 : i32
    %c0_i32_0 = arith.constant 0 : i32
    %c0_i32_1 = arith.constant 0 : i32
    return %arg0, %c0_i32, %c0_i32_0 : i32, i32, i32
  }
  func.func @transform_1(%arg0: i32) -> (i32, i32) {
    %c0_i32 = arith.constant 0 : i32
    %c0_i32_0 = arith.constant 0 : i32
    %c0_i32_1 = arith.constant 0 : i32
    return %c0_i32, %c0_i32_0 : i32, i32
  }
  func.func @transform_2(%arg0: i32) -> (i32, i32) {
    %c0_i32 = arith.constant 0 : i32
    %c0_i32_0 = arith.constant 0 : i32
    %c0_i32_1 = arith.constant 0 : i32
    return %c0_i32, %c0_i32_0 : i32, i32
  }
  func.func @transform_3(%arg0: i32) -> (i32, i32) {
    %c0_i32 = arith.constant 0 : i32
    %c0_i32_0 = arith.constant 0 : i32
    %c0_i32_1 = arith.constant 0 : i32
    return %c0_i32, %c0_i32_0 : i32, i32
  }
  func.func @transform_4(%arg0: i32) -> (i32, i32, i32) {
    %c0_i32 = arith.constant 0 : i32
    %c0_i32_0 = arith.constant 0 : i32
    %c0_i32_1 = arith.constant 0 : i32
    return %arg0, %c0_i32, %c0_i32_0 : i32, i32, i32
  }
}

</mosaic_0001>

<bundles_post_ra>
// kernel: tpu_custom_call.1
= control target key start
LH: loop header
LB: loop body
LE: loop exit
PB: predicated region body
PF: predicated region fallthrough
CT: control target
= control target key end

     0   :  { %9 = vsyncpa [#allocation3], 0  ;;  %s1909_s0 = inlined_call_operand.vmem [shape: f32[2,256,64], index: 0, kind: input, shape index: {}]   ;;  %s1910_s1 = inlined_call_operand.vmem [shape: bf16[64,32], index: 1, kind: input, shape index: {}]   ;;  %s1911_s2 = inlined_call_operand.vmem [shape: f32[1,32], index: 2, kind: input, shape index: {}]   ;;  %s1912_s3 = inlined_call_operand.vmem [shape: f32[1,32], index: 3, kind: input, shape index: {}]   ;;  %s1913_s4 = inlined_call_operand.hbm [shape: bf16[2,32,256], index: 4, kind: output, shape index: {}]  }
   0x1   :  { %11 = vsyncpa [#allocation3 + $0x1], 0  ;;  %s1352_s15 = smov 0   ;;  %s1354_s16 = smov 0  }
   0x2   :  { %s1356_s17 = smov 0   ;;  %s1358_s18 = smov 0  }
   0x3 LB: > { %s1373_s19 = sadd.s32 4294967295, %s1322_s18   ;;  %s1037_s20 = sadd.s32 4294967294, %s1322_s18   ;;  %s1322_s18 = sphi %s1358_s18, %s1936_s18   ;;  %s1318_s17 = sphi %s1356_s17, %s1935_s17   ;;  %s1314_s16 = sphi %s1354_s16, %s1934_s16   ;;  %s1310_s15 = sphi %s1352_s15, %s1933_s15  }
   0x4   : > { %s1377_s21 = sadd.s32 1, %s1322_s18   ;;  %s113_s22 = sadd.s32 1, %s1318_s17 }
   0x5   : > { %s110_s23 = ssub.s32 %s1322_s18, %s1377_s21  ;;  %p123_p0 = scmp.ne.s32.totalorder %s1318_s17, %s1314_s16 }
   0x6   : > { %p111_p1 = scmp.eq.s32.totalorder %s110_s23, 0  ;;  %p124_p2 = scmp.eq.s32.totalorder %s1373_s19, 1 }
   0x7   : > { %p129_p3 = scmp.ne.s32.totalorder %s1314_s16, %s1310_s15  ;;  %p130_p4 = scmp.eq.s32.totalorder %s1037_s20, 1 }
   0x8   : > { %s1388_s24 = scalar_select %p111_p1, %s1318_s17, %s113_s22  }
   0x9   : > { %p1390_p5 = por %p124_p2, %p123_p0  ;;  %p1394_p6 = por %p130_p4, %p129_p3 }
   0xa   : > { %p1040_p7 = scmp.ge.s32.totalorder %s1322_s18, 1  ;;  %p165_p8 = scmp.lt.s32.totalorder %s1322_s18, 3 }
   0xc   : > { %p166_p9 = pnand %p1040_p7, %p165_p8 }
   0xe   : > { %169 = sbr.rel (%p166_p9) target bundleno = 718 (0x2ce), region = 36 }
  0x13   : > { %v1256_v0 = vld [vmem:[%s1910_s1 + $0x18] sm:$0xff]   ;;  %p191_p10 = scmp.lt.s32.totalorder %s1373_s19, 1  ;;  %v1257_v1 = vld [vmem:[%s1910_s1 + $0x10] sm:$0xff]   ;;  %v1258_v2 = vld [vmem:[%s1910_s1 + $0x8] sm:$0xff]   ;;  %vm277_vm0 = vcmask 523264   ;;  %vm487_vm1 = vcmask 261120  }
  0x14   : > { %1099 = vmatprep.subr.bf16.mxu0 %v1256_v0  ;;  %1139 = vmatprep.subr.bf16.mxu1 %v1256_v0  ;;  %v1259_v6 = vld [vmem:[%s1910_s1] sm:$0xff]   ;;  %vm664_vm8 = vcmask 253952  }
  0x15   : > { %s192_s5 = scalar_select %p191_p10, %s1373_s19, 1  ;;  %1100 = vmatpush3.bf16.msra.mxu0 %v1256_v0  ;;  %1143 = vmatpush3.bf16.msra.mxu1 %v1256_v0 }
  0x16   : > { %1101 = vmatprep.subr.bf16.mxu0 %v1257_v1  ;;  %1140 = vmatprep.subr.bf16.mxu1 %v1257_v1 }
  0x17   : > { %s1073_s8 = sshll.u32 %s192_s5, 8 }
  0x18   : > { %s1414_s11 = scalar_lea.vmem %s1909_s0, %s1073_s8 }
  0x19   : > { %v197_v3 = vld [vmem:[%s1414_s11] sm:$0xff]  ;;  %v198_v4 = vld [vmem:[%s1414_s11 + $0x8] sm:$0xff]  ;;  %1102 = vmatpush3.bf16.msra.mxu0 %v1257_v1  ;;  %1144 = vmatpush3.bf16.msra.mxu1 %v1257_v1  ;;  %v199_v7 = vld [vmem:[%s1414_s11 + $0x10] sm:$0xff] }
  0x1a   : > { %v229_v5 = vpack.c.bf16 %v198_v4, %v197_v3  ;;  %1103 = vmatprep.subr.bf16.mxu0 %v1258_v2  ;;  %1141 = vmatprep.subr.bf16.mxu1 %v1258_v2  ;;  %v200_v8 = vld [vmem:[%s1414_s11 + $0x18] sm:$0xff]  ;;  %v201_v9 = vld [vmem:[%s1414_s11 + $0x20] sm:$0xff]  ;;  %v202_v10 = vld [vmem:[%s1414_s11 + $0x28] sm:$0xff] }
  0x1b   : > { %v213_v11 = vld [vmem:[%s1414_s11 + $0x80] sm:$0xff]  ;;  %v214_v12 = vld [vmem:[%s1414_s11 + $0x88] sm:$0xff]  ;;  %v215_v14 = vld [vmem:[%s1414_s11 + $0x90] sm:$0xff]  ;;  %v230_v18 = vpack.c.bf16 %v200_v8, %v199_v7  ;;  %v231_v20 = vpack.c.bf16 %v202_v10, %v201_v9 }
  0x1c   : > { %1107 = vmatprep.mubr.msk.bf16.mxu0 %vm277_vm0, %v229_v5  ;;  %v237_v13 = vpack.c.bf16 %v214_v12, %v213_v11  ;;  %v216_v15 = vld [vmem:[%s1414_s11 + $0x98] sm:$0xff]  ;;  %v217_v16 = vld [vmem:[%s1414_s11 + $0xa0] sm:$0xff]  ;;  %v218_v17 = vld [vmem:[%s1414_s11 + $0xa8] sm:$0xff] }
  0x1d   : > { %1104 = vmatpush3.bf16.msra.mxu0 %v1258_v2  ;;  %1145 = vmatpush3.bf16.msra.mxu1 %v1258_v2  ;;  %v238_v19 = vpack.c.bf16 %v216_v15, %v215_v14  ;;  %v239_v21 = vpack.c.bf16 %v218_v17, %v217_v16  ;;  %v203_v22 = vld [vmem:[%s1414_s11 + $0x30] sm:$0xff]  ;;  %v204_v23 = vld [vmem:[%s1414_s11 + $0x38] sm:$0xff]  ;;  %v205_v24 = vld [vmem:[%s1414_s11 + $0x40] sm:$0xff] }
  0x1e   : > { %1105 = vmatprep.subr.bf16.mxu0 %v1259_v6  ;;  %1142 = vmatprep.subr.bf16.mxu1 %v1259_v6  ;;  %v219_v25 = vld [vmem:[%s1414_s11 + $0xb0] sm:$0xff]  ;;  %v220_v26 = vld [vmem:[%s1414_s11 + $0xb8] sm:$0xff]  ;;  %v206_v27 = vld [vmem:[%s1414_s11 + $0x48] sm:$0xff]  ;;  %v232_v30 = vpack.c.bf16 %v204_v23, %v203_v22 }
  0x1f   : > { %1123 = vmatprep.mubr.msk.bf16.mxu1 %vm277_vm0, %v237_v13  ;;  %v221_v28 = vld [vmem:[%s1414_s11 + $0xc0] sm:$0xff]  ;;  %v222_v29 = vld [vmem:[%s1414_s11 + $0xc8] sm:$0xff]  ;;  %v240_v31 = vpack.c.bf16 %v220_v26, %v219_v25  ;;  %v233_v32 = vpack.c.bf16 %v206_v27, %v205_v24  ;;  %v207_v34 = vld [vmem:[%s1414_s11 + $0x50] sm:$0xff] }
  0x20   : > { %v241_v33 = vpack.c.bf16 %v222_v29, %v221_v28  ;;  %v208_v35 = vld [vmem:[%s1414_s11 + $0x58] sm:$0xff]  ;;  %v209_v36 = vld [vmem:[%s1414_s11 + $0x60] sm:$0xff]  ;;  %v223_v37 = vld [vmem:[%s1414_s11 + $0xd0] sm:$0xff] }
  0x21   : > { %1106 = vmatpush3.bf16.msra.mxu0 %v1259_v6  ;;  %1146 = vmatpush3.bf16.msra.mxu1 %v1259_v6  ;;  %v224_v38 = vld [vmem:[%s1414_s11 + $0xd8] sm:$0xff]  ;;  %v210_v39 = vld [vmem:[%s1414_s11 + $0x68] sm:$0xff]  ;;  %v225_v40 = vld [vmem:[%s1414_s11 + $0xe0] sm:$0xff]  ;;  %v234_v42 = vpack.c.bf16 %v208_v35, %v207_v34 }
  0x22   : > { %v226_v41 = vld [vmem:[%s1414_s11 + $0xe8] sm:$0xff]  ;;  %v242_v43 = vpack.c.bf16 %v224_v38, %v223_v37  ;;  %v235_v44 = vpack.c.bf16 %v210_v39, %v209_v36  ;;  %v211_v46 = vld [vmem:[%s1414_s11 + $0x70] sm:$0xff]  ;;  %v212_v47 = vld [vmem:[%s1414_s11 + $0x78] sm:$0xff] }
  0x23   : > { %v243_v45 = vpack.c.bf16 %v226_v41, %v225_v40  ;;  %v227_v48 = vld [vmem:[%s1414_s11 + $0xf0] sm:$0xff]  ;;  %v228_v49 = vld [vmem:[%s1414_s11 + $0xf8] sm:$0xff]  ;;  %v236_v50 = vpack.c.bf16 %v212_v47, %v211_v46 }
  0x24   : > { %1108 = vmatmul.mubr.msk.bf16.vlgmr.msra.gmra.mxu0 %vm277_vm0, %v230_v18  ;;  %1124 = vmatmul.mubr.msk.bf16.vlgmr.msra.gmra.mxu1 %vm277_vm0, %v238_v19  ;;  %v244_v51 = vpack.c.bf16 %v228_v49, %v227_v48 }
  0x25   : > { %1111 = vmatprep.mubr.msk.bf16.mxu0 %vm277_vm0, %v231_v20  ;;  %1127 = vmatprep.mubr.msk.bf16.mxu1 %vm277_vm0, %v239_v21 }
  0x2c   : > { %1112 = vmatmul.mubr.msk.bf16.gmra.mxu0 %vm277_vm0, %v232_v30  ;;  %1128 = vmatmul.mubr.msk.bf16.gmra.mxu1 %vm277_vm0, %v240_v31 }
  0x2d   : > { %1115 = vmatprep.mubr.msk.bf16.mxu0 %vm277_vm0, %v233_v32  ;;  %1131 = vmatprep.mubr.msk.bf16.mxu1 %vm277_vm0, %v241_v33 }
  0x34   : > { %1116 = vmatmul.mubr.msk.bf16.gmra.mxu0 %vm277_vm0, %v234_v42  ;;  %1132 = vmatmul.mubr.msk.bf16.gmra.mxu1 %vm277_vm0, %v242_v43 }
  0x35   : > { %1119 = vmatprep.mubr.msk.bf16.mxu0 %vm277_vm0, %v235_v44  ;;  %1135 = vmatprep.mubr.msk.bf16.mxu1 %vm277_vm0, %v243_v45 }
  0x3c   : > { %1120 = vmatmul.mubr.msk.bf16.gmra.mxu0 %vm277_vm0, %v236_v50  ;;  %1136 = vmatmul.mubr.msk.bf16.gmra.mxu1 %vm277_vm0, %v244_v51 }
  0xe4   : > { %v1467_v52 = vpop.f32.mrf.mxu0  ;;  %v1469_v53 = vpop.f32.mrf.mxu1 }
  0xe5   : > { %v559_v60 = vmul.f32 %v1467_v52, %v1467_v52  ;;  %v491_v2 = vsel %vm487_vm1, %v1467_v52, 0.0 }
  0xe6   : > { %v1471_v54 = vpop.f32.mrf.mxu0  ;;  %v1473_v55 = vpop.f32.mrf.mxu1 }
  0xe7   : > { %v557_v57 = vmul.f32 %v1471_v54, %v1471_v54  ;;  %v488_v61 = vsel %vm487_vm1, %v1471_v54, 0.0  ;;  %v592_v10 = vsel %vm487_vm1, %v559_v60, 0.0 }
  0xe8   : > { %v1475_v56 = vpop.f32.mrf.mxu0  ;;  %v1481_v59 = vpop.f32.mrf.mxu1 }
  0xe9   : > { %v589_v3 = vsel %vm487_vm1, %v557_v57, 0.0  ;;  %v560_v4 = vmul.f32 %v1475_v56, %v1475_v56  ;;  %v493_v11 = vsel %vm487_vm1, %v1475_v56, 0.0 }
  0xea   : > { %v1479_v58 = vpop.f32.mrf.mxu0  ;;  %v1501_v9 = vpop.f32.mrf.mxu1 }
  0xeb   : > { %v489_v62 = vsel %vm487_vm1, %v1479_v58, 0.0  ;;  %v558_v63 = vmul.f32 %v1479_v58, %v1479_v58  ;;  %v594_v16 = vsel %vm487_vm1, %v560_v4, 0.0 }
  0xec   : > { %v490_v0 = vadd.f32 %v489_v62, %v488_v61  ;;  %v1491_v1 = vpop.f32.mrf.mxu0  ;;  %v1515_v21 = vpop.f32.mrf.mxu1 }
  0xed   : > { %v590_v5 = vsel %vm487_vm1, %v558_v63, 0.0  ;;  %v563_v22 = vmul.f32 %v1491_v1, %v1491_v1  ;;  %v499_v29 = vsel %vm487_vm1, %v1491_v1, 0.0 }
  0xee   : > { %v492_v6 = vadd.f32 %v491_v2, %v490_v0  ;;  %v591_v7 = vadd.f32 %v590_v5, %v589_v3  ;;  %v1499_v8 = vpop.f32.mrf.mxu0  ;;  %v1533_v35 = vpop.f32.mrf.mxu1 }
  0xef   : > { %v561_v12 = vmul.f32 %v1499_v8, %v1499_v8  ;;  %v495_v17 = vsel %vm487_vm1, %v1499_v8, 0.0  ;;  %v600_v36 = vsel %vm487_vm1, %v563_v22, 0.0 }
  0xf0   : > { %v593_v13 = vadd.f32 %v592_v10, %v591_v7  ;;  %v494_v14 = vadd.f32 %v493_v11, %v492_v6  ;;  %v1508_v15 = vpop.f32.mrf.mxu0  ;;  %v1547_v47 = vpop.f32.mrf.mxu1 }
  0xf1   : > { %v596_v23 = vsel %vm487_vm1, %v561_v12, 0.0  ;;  %v564_v30 = vmul.f32 %v1508_v15, %v1508_v15  ;;  %v501_v37 = vsel %vm487_vm1, %v1508_v15, 0.0 }
  0xf2   : > { %v496_v18 = vadd.f32 %v495_v17, %v494_v14  ;;  %v595_v19 = vadd.f32 %v594_v16, %v593_v13  ;;  %v1513_v20 = vpop.f32.mrf.mxu0  ;;  %v1565_v5 = vpop.f32.mrf.mxu1 }
  0xf3   : > { %v497_v24 = vsel %vm487_vm1, %v1513_v20, 0.0  ;;  %v562_v25 = vmul.f32 %v1513_v20, %v1513_v20  ;;  %v602_v42 = vsel %vm487_vm1, %v564_v30, 0.0 }
  0xf4   : > { %v597_v26 = vadd.f32 %v596_v23, %v595_v19  ;;  %v498_v27 = vadd.f32 %v497_v24, %v496_v18  ;;  %v1524_v28 = vpop.f32.mrf.mxu0  ;;  %v1579_v22 = vpop.f32.mrf.mxu1 }
  0xf5   : > { %v598_v31 = vsel %vm487_vm1, %v562_v25, 0.0  ;;  %v567_v48 = vmul.f32 %v1524_v28, %v1524_v28  ;;  %v507_v62 = vsel %vm487_vm1, %v1524_v28, 0.0 }
  0xf6   : > { %v500_v32 = vadd.f32 %v499_v29, %v498_v27  ;;  %v599_v33 = vadd.f32 %v598_v31, %v597_v26  ;;  %v1531_v34 = vpop.f32.mrf.mxu0 }
  0xf7   : > { %v565_v38 = vmul.f32 %v1531_v34, %v1531_v34  ;;  %v503_v43 = vsel %vm487_vm1, %v1531_v34, 0.0  ;;  %v608_v6 = vsel %vm487_vm1, %v567_v48, 0.0  ;;  %v574_v48 = vmul.f32 %v1501_v9, %v1501_v9 }
  0xf8   : > { %v601_v39 = vadd.f32 %v600_v36, %v599_v33  ;;  %v502_v40 = vadd.f32 %v501_v37, %v500_v32  ;;  %v1540_v41 = vpop.f32.mrf.mxu0  ;;  %v1593_v37 = vpop.f32.mrf.mxu1 }
  0xf9   : > { %v604_v49 = vsel %vm487_vm1, %v565_v38, 0.0  ;;  %v568_v63 = vmul.f32 %v1540_v41, %v1540_v41  ;;  %v509_v7 = vsel %vm487_vm1, %v1540_v41, 0.0 }
  0xfa   : > { %v504_v44 = vadd.f32 %v503_v43, %v502_v40  ;;  %v603_v45 = vadd.f32 %v602_v42, %v601_v39  ;;  %v1545_v46 = vpop.f32.mrf.mxu0  ;;  %v573_v40 = vmul.f32 %v1473_v55, %v1473_v55 }
  0xfb   : > { %v505_v50 = vsel %vm487_vm1, %v1545_v46, 0.0  ;;  %v566_v51 = vmul.f32 %v1545_v46, %v1545_v46  ;;  %v610_v14 = vsel %vm487_vm1, %v568_v63, 0.0 }
  0xfc   : > { %v605_v57 = vadd.f32 %v604_v49, %v603_v45  ;;  %v506_v60 = vadd.f32 %v505_v50, %v504_v44  ;;  %v1556_v61 = vpop.f32.mrf.mxu0  ;;  %v519_v45 = vsel %vm487_vm1, %v1473_v55, 0.0 }
  0xfd   : > { %v606_v0 = vsel %vm487_vm1, %v566_v51, 0.0  ;;  %v571_v23 = vmul.f32 %v1556_v61, %v1556_v61  ;;  %v515_v30 = vsel %vm487_vm1, %v1556_v61, 0.0  ;;  %v1605_v51 = vpop.f32.mrf.mxu1 }
  0xfe   : > { %v508_v2 = vadd.f32 %v507_v62, %v506_v60  ;;  %v607_v3 = vadd.f32 %v606_v0, %v605_v57  ;;  %v1563_v4 = vpop.f32.mrf.mxu0  ;;  %v575_v57 = vmul.f32 %v1469_v53, %v1469_v53  ;;  %v620_v60 = vsel %vm487_vm1, %v573_v40, 0.0 }
  0xff   : > { %v569_v10 = vmul.f32 %v1563_v4, %v1563_v4  ;;  %v511_v16 = vsel %vm487_vm1, %v1563_v4, 0.0  ;;  %v616_v38 = vsel %vm487_vm1, %v571_v23, 0.0  ;;  %v521_v62 = vsel %vm487_vm1, %v1501_v9, 0.0 }
 0x100   : > { %v609_v11 = vadd.f32 %v608_v6, %v607_v3  ;;  %v510_v12 = vadd.f32 %v509_v7, %v508_v2  ;;  %v1572_v13 = vpop.f32.mrf.mxu0  ;;  %v523_v2 = vsel %vm487_vm1, %v1469_v53, 0.0  ;;  %v576_v3 = vmul.f32 %v1481_v59, %v1481_v59 }
 0x101   : > { %1920 = vst [vmem:[#allocation5_spill] sm:$0xff] %v1572_v13  ;;  %v612_v24 = vsel %vm487_vm1, %v569_v10, 0.0  ;;  %v572_v31 = vmul.f32 %v1572_v13, %v1572_v13  ;;  %v517_v39 = vsel %vm487_vm1, %v1572_v13, 0.0  ;;  %v622_v6 = vsel %vm487_vm1, %v574_v48, 0.0 }
 0x102   : > { %v512_v17 = vadd.f32 %v511_v16, %v510_v12  ;;  %v611_v18 = vadd.f32 %v610_v14, %v609_v11  ;;  %v1577_v19 = vpop.f32.mrf.mxu0  ;;  %v1617_v11 = vpop.f32.mrf.mxu1  ;;  %v624_v12 = vsel %vm487_vm1, %v575_v57, 0.0  ;;  %v525_v14 = vsel %vm487_vm1, %v1481_v59, 0.0 }
 0x103   : > { %v513_v25 = vsel %vm487_vm1, %v1577_v19, 0.0  ;;  %v570_v26 = vmul.f32 %v1577_v19, %v1577_v19  ;;  %v618_v44 = vsel %vm487_vm1, %v572_v31, 0.0  ;;  %v577_v16 = vmul.f32 %v1533_v35, %v1533_v35 }
 0x104   : > { %v613_v27 = vadd.f32 %v612_v24, %v611_v18  ;;  %v514_v29 = vadd.f32 %v513_v25, %v512_v17  ;;  %v626_v23 = vsel %vm487_vm1, %v576_v3, 0.0  ;;  %v527_v24 = vsel %vm487_vm1, %v1533_v35, 0.0 }
 0x105   : > { %v614_v32 = vsel %vm487_vm1, %v570_v26, 0.0  ;;  %v578_v25 = vmul.f32 %v1565_v5, %v1565_v5  ;;  %v628_v31 = vsel %vm487_vm1, %v577_v16, 0.0  ;;  %v533_v48 = vsel %vm487_vm1, %v1547_v47, 0.0 }
 0x106   : > { %v516_v33 = vadd.f32 %v515_v30, %v514_v29  ;;  %v615_v36 = vadd.f32 %v614_v32, %v613_v27  ;;  %v1629_v29 = vpop.f32.mrf.mxu1  ;;  %v579_v30 = vmul.f32 %v1515_v21, %v1515_v21  ;;  %v529_v32 = vsel %vm487_vm1, %v1565_v5, 0.0 }
 0x107   : > { %1921 = vst [vmem:[#allocation6_spill] sm:$0xff] %v1629_v29  ;;  %v630_v40 = vsel %vm487_vm1, %v578_v25, 0.0  ;;  %v539_v16 = vsel %vm487_vm1, %v1579_v22, 0.0 }
 0x108   : > { %v518_v42 = vadd.f32 %v517_v39, %v516_v33  ;;  %v617_v43 = vadd.f32 %v616_v38, %v615_v36  ;;  %v531_v38 = vsel %vm487_vm1, %v1515_v21, 0.0  ;;  %v580_v39 = vmul.f32 %v1547_v47, %v1547_v47 }
 0x10a   : > { %v619_v49 = vadd.f32 %v618_v44, %v617_v43  ;;  %v520_v50 = vadd.f32 %v519_v45, %v518_v42  ;;  %v1641_v44 = vpop.f32.mrf.mxu1  ;;  %v632_v45 = vsel %vm487_vm1, %v579_v30, 0.0 }
 0x10b   : > { %v585_v30 = vmul.f32 %v1641_v44, %v1641_v44 }
 0x10c   : > { %v522_v63 = vadd.f32 %v521_v62, %v520_v50  ;;  %v621_v0 = vadd.f32 %v620_v60, %v619_v49  ;;  %v581_v49 = vmul.f32 %v1593_v37, %v1593_v37  ;;  %v634_v60 = vsel %vm487_vm1, %v580_v39, 0.0  ;;  %v1653_v3 = vpop.f32.mrf.mxu1 }
 0x10d   : > { %v535_v62 = vsel %vm487_vm1, %v1593_v37, 0.0  ;;  %1922 = vst [vmem:[#allocation7_spill] sm:$0xff] %v1653_v3 }
 0x10e   : > { %v524_v7 = vadd.f32 %v523_v2, %v522_v63  ;;  %v623_v10 = vadd.f32 %v622_v6, %v621_v0  ;;  %v582_v63 = vmul.f32 %v1617_v11, %v1617_v11  ;;  %v583_v6 = vmul.f32 %v1579_v22, %v1579_v22  ;;  %v1665_v25 = vpop.f32.mrf.mxu1 }
 0x110   : > { %v625_v17 = vadd.f32 %v624_v12, %v623_v10  ;;  %v526_v18 = vadd.f32 %v525_v14, %v524_v7  ;;  %v636_v7 = vsel %vm487_vm1, %v581_v49, 0.0  ;;  %v537_v10 = vsel %vm487_vm1, %v1617_v11, 0.0 }
 0x112   : > { %v528_v26 = vadd.f32 %v527_v24, %v526_v18  ;;  %v627_v27 = vadd.f32 %v626_v23, %v625_v17  ;;  %v584_v17 = vmul.f32 %v1605_v51, %v1605_v51  ;;  %v638_v18 = vsel %vm487_vm1, %v582_v63, 0.0 }
 0x114   : > { %v629_v33 = vadd.f32 %v628_v31, %v627_v27  ;;  %v530_v36 = vadd.f32 %v529_v32, %v528_v26  ;;  %v640_v26 = vsel %vm487_vm1, %v583_v6, 0.0  ;;  %v541_v27 = vsel %vm487_vm1, %v1605_v51, 0.0 }
 0x116   : > { %v532_v42 = vadd.f32 %v531_v38, %v530_v36  ;;  %v631_v43 = vadd.f32 %v630_v40, %v629_v33  ;;  %v642_v33 = vsel %vm487_vm1, %v584_v17, 0.0  ;;  %v543_v36 = vsel %vm487_vm1, %v1641_v44, 0.0 }
 0x117   : > { %v586_v38 = vmul.f32 %v1665_v25, %v1665_v25 }
 0x118   : > { %v633_v50 = vadd.f32 %v632_v45, %v631_v43  ;;  %v534_v57 = vadd.f32 %v533_v48, %v532_v42  ;;  %v587_v42 = vmul.f32 %v1629_v29, %v1629_v29  ;;  %v644_v43 = vsel %vm487_vm1, %v585_v30, 0.0 }
 0x119   : > { %v545_v45 = vsel %vm487_vm1, %v1665_v25, 0.0 }
 0x11a   : > { %v536_v0 = vadd.f32 %v535_v62, %v534_v57  ;;  %v635_v2 = vadd.f32 %v634_v60, %v633_v50  ;;  %v547_v50 = vsel %vm487_vm1, %v1629_v29, 0.0  ;;  %v588_v57 = vmul.f32 %v1653_v3, %v1653_v3 }
 0x11b   : > { %v646_v60 = vsel %vm487_vm1, %v586_v38, 0.0 }
 0x11c   : > { %v637_v12 = vadd.f32 %v636_v7, %v635_v2  ;;  %v538_v14 = vadd.f32 %v537_v10, %v536_v0  ;;  %v648_v0 = vsel %vm487_vm1, %v587_v42, 0.0  ;;  %v549_v2 = vsel %vm487_vm1, %v1653_v3, 0.0 }
 0x11d   : > { %v1914_v10 = vlaneseq }
 0x11e   : > { %v540_v23 = vadd.f32 %v539_v16, %v538_v14  ;;  %v639_v24 = vadd.f32 %v638_v18, %v637_v12  ;;  %v650_v12 = vsel %vm487_vm1, %v588_v57, 0.0 }
 0x120   : > { %v641_v31 = vadd.f32 %v640_v26, %v639_v24  ;;  %v542_v32 = vadd.f32 %v541_v27, %v540_v23  ;;  %v1692_v23 = vand.u32 127, %v1914_v10 }
 0x122   : > { %v544_v39 = vadd.f32 %v543_v36, %v542_v32  ;;  %v643_v40 = vadd.f32 %v642_v33, %v641_v31  ;;  %vm692_vm2 = vcmp.ge.s32.totalorder %v1692_v23, 8  ;;  %vm693_vm3 = vcmp.lt.s32.totalorder %v1692_v23, 16 }
 0x123   : > { %vm723_vm4 = vcmp.ge.s32.totalorder %v1692_v23, 16  ;;  %vm724_vm5 = vcmp.lt.s32.totalorder %v1692_v23, 24  ;;  %vm1698_vm6 = vmand %vm692_vm2, %vm693_vm3  ;;  %vm661_vm7 = vcmp.lt.s32.totalorder %v1692_v23, 8  ;;  %vm754_vm10 = vcmp.ge.s32.totalorder %v1692_v23, 24 }
 0x124   : > { %v645_v48 = vadd.f32 %v644_v43, %v643_v40  ;;  %v546_v49 = vadd.f32 %v545_v45, %v544_v39  ;;  %vm1703_vm9 = vmand %vm723_vm4, %vm724_vm5  ;;  %vm755_vm11 = vcmp.lt.s32.totalorder %v1692_v23, 32 }
 0x125   : > { %vm1725_vm12 = vmand %vm754_vm10, %vm755_vm11 }
 0x126   : > { %v548_v62 = vadd.f32 %v547_v50, %v546_v49  ;;  %v647_v63 = vadd.f32 %v646_v60, %v645_v48 }
 0x128   : > { %v550_v6 = vadd.f32 %v549_v2, %v548_v62  ;;  %v649_v7 = vadd.f32 %v648_v0, %v647_v63 }
 0x12a   : > { %v551_v14 = vrot.slane %v550_v6, 4  ;;  %v651_v16 = vadd.f32 %v650_v12, %v649_v7 }
 0x12c   : > { %v552_v17 = vadd.f32 %v551_v14, %v550_v6  ;;  %v652_v18 = vrot.slane %v651_v16, 4 }
 0x12e   : > { %v553_v24 = vrot.slane %v552_v17, 2  ;;  %v653_v26 = vadd.f32 %v652_v18, %v651_v16 }
 0x130   : > { %v654_v27 = vrot.slane %v653_v26, 2  ;;  %v554_v30 = vadd.f32 %v553_v24, %v552_v17 }
 0x132   : > { %v555_v31 = vrot.slane %v554_v30, 1  ;;  %v655_v32 = vadd.f32 %v654_v27, %v653_v26 }
 0x134   : > { %v556_v36 = vadd.f32 %v555_v31, %v554_v30  ;;  %v656_v38 = vrot.slane %v655_v32, 1 }
 0x136   : > { %v695_v40 = vsel %vm1698_vm6, %v556_v36, 0.0  ;;  %v663_v42 = vsel %vm661_vm7, %v556_v36, 0.0  ;;  %v657_v43 = vadd.f32 %v656_v38, %v655_v32  ;;  %v726_v50 = vsel %vm1703_vm9, %v556_v36, 0.0 }
 0x137   : > { %v696_v45 = vsel %vm664_vm8, %v695_v40, 0.0  ;;  %v665_v48 = vsel %vm664_vm8, %v663_v42, 0.0  ;;  %v727_v60 = vsel %vm664_vm8, %v726_v50, 0.0  ;;  %v757_v12 = vsel %vm1725_vm12, %v556_v36, 0.0 }
 0x138   : > { %697 = vadd.xlane.f32.xlu1 %v696_v45  ;;  %666 = vadd.xlane.f32.xlu0 %v665_v48  ;;  %v706_v49 = vsel %vm1698_vm6, %v657_v43, 0.0  ;;  %v737_v62 = vsel %vm1703_vm9, %v657_v43, 0.0  ;;  %v675_v63 = vsel %vm661_vm7, %v657_v43, 0.0  ;;  %v768_v7 = vsel %vm1725_vm12, %v657_v43, 0.0 }
 0x139   : > { %v707_v57 = vsel %vm664_vm8, %v706_v49, 0.0  ;;  %v738_v2 = vsel %vm664_vm8, %v737_v62, 0.0  ;;  %v676_v6 = vsel %vm664_vm8, %v675_v63, 0.0  ;;  %v769_v14 = vsel %vm664_vm8, %v768_v7, 0.0 }
 0x13a   : > { %v758_v16 = vsel %vm664_vm8, %v757_v12, 0.0 }
 0x13c   : > { %708 = vadd.xlane.f32.xlu1 %v707_v57  ;;  %728 = vadd.xlane.f32.xlu0 %v727_v60 }
 0x140   : > { %739 = vadd.xlane.f32.xlu1 %v738_v2  ;;  %677 = vadd.xlane.f32.xlu0 %v676_v6 }
 0x144   : > { %770 = vadd.xlane.f32.xlu1 %v769_v14  ;;  %759 = vadd.xlane.f32.xlu0 %v758_v16 }
 0x1c1   : > { %v698_v17 = vpop.xlane.xlu1 %697  ;;  %v667_v18 = vpop.xlane.xlu0 %666 }
 0x1c2   : > { %v699_v24 = vrot.slane %v698_v17, 4  ;;  %v668_v26 = vrot.slane %v667_v18, 4 }
 0x1c4   : > { %v669_v27 = vadd.f32 %v668_v26, %v667_v18  ;;  %v700_v30 = vadd.f32 %v699_v24, %v698_v17 }
 0x1c5   : > { %v709_v31 = vpop.xlane.xlu1 %708  ;;  %v729_v32 = vpop.xlane.xlu0 %728 }
 0x1c6   : > { %v670_v38 = vrot.slane %v669_v27, 2  ;;  %v710_v40 = vrot.slane %v709_v31, 4  ;;  %v730_v42 = vrot.slane %v729_v32, 4  ;;  %v701_v48 = vrot.slane %v700_v30, 2 }
 0x1c8   : > { %v711_v43 = vadd.f32 %v710_v40, %v709_v31  ;;  %v731_v45 = vadd.f32 %v730_v42, %v729_v32  ;;  %v671_v36 = vadd.f32 %v670_v38, %v669_v27  ;;  %v702_v17 = vadd.f32 %v701_v48, %v700_v30 }
 0x1c9   : > { %v740_v49 = vpop.xlane.xlu1 %739  ;;  %v678_v50 = vpop.xlane.xlu0 %677 }
 0x1ca   : > { %v712_v57 = vrot.slane %v711_v43, 2  ;;  %v741_v60 = vrot.slane %v740_v49, 4  ;;  %v679_v62 = vrot.slane %v678_v50, 4  ;;  %v732_v63 = vrot.slane %v731_v45, 2 }
 0x1cb   : > { %v672_v2 = vrot.slane %v671_v36, 1  ;;  %v703_v3 = vrot.slane %v702_v17, 1 }
 0x1cc   : > { %v742_v6 = vadd.f32 %v741_v60, %v740_v49  ;;  %v680_v7 = vadd.f32 %v679_v62, %v678_v50  ;;  %v713_v18 = vadd.f32 %v712_v57, %v711_v43  ;;  %v733_v27 = vadd.f32 %v732_v63, %v731_v45 }
 0x1cd   : > { %v771_v12 = vpop.xlane.xlu1 %770  ;;  %v760_v14 = vpop.xlane.xlu0 %759  ;;  %v673_v16 = vadd.f32 %v672_v2, %v671_v36  ;;  %v704_v48 = vadd.f32 %v703_v3, %v702_v17 }
 0x1ce   : > { %v743_v24 = vrot.slane %v742_v6, 2  ;;  %v681_v26 = vrot.slane %v680_v7, 2  ;;  %v772_v31 = vrot.slane %v771_v12, 4  ;;  %v761_v32 = vrot.slane %v760_v14, 4 }
 0x1cf   : > { %1147 = vpush %v673_v16  ;;  %v714_v13 = vrot.slane %v713_v18, 1  ;;  %v734_v62 = vrot.slane %v733_v27, 1 }
 0x1d0   : > { %v773_v38 = vadd.f32 %v772_v31, %v771_v12  ;;  %v762_v40 = vadd.f32 %v761_v32, %v760_v14  ;;  %v682_v42 = vadd.f32 %v681_v26, %v680_v7  ;;  %v744_v10 = vadd.f32 %v743_v24, %v742_v6 }
 0x1d1   : > { %v715_v57 = vadd.f32 %v714_v13, %v713_v18  ;;  %v735_v63 = vadd.f32 %v734_v62, %v733_v27  ;;  %v1929_v62 = vlaneseq }
 0x1d2   : > { %v774_v29 = vrot.slane %v773_v38, 2  ;;  %v763_v49 = vrot.slane %v762_v40, 2  ;;  %v683_v50 = vrot.slane %v682_v42, 1  ;;  %v745_v60 = vrot.slane %v744_v10, 1 }
 0x1d3   : > { %v796_v39 = vshrl.u32 %v1929_v62, 7 }
 0x1d4   : > { %v775_v36 = vadd.f32 %v774_v29, %v773_v38  ;;  %v684_v30 = vadd.f32 %v683_v50, %v682_v42  ;;  %v764_v43 = vadd.f32 %v763_v49, %v762_v40  ;;  %v746_v2 = vadd.f32 %v745_v60, %v744_v10  ;;  %v790_v60 = vld [vmem:[%s1911_s2] sm:$0x1] }
 0x1d6   : > { %1149 = vpush %v684_v30  ;;  %v765_v16 = vrot.slane %v764_v43, 1  ;;  %v776_v45 = vrot.slane %v775_v36, 1 }
 0x1d7   : > { %1151 = vpush %v704_v48  ;;  %v797_v48 = vsub.s32 0, %v796_v39 }
 0x1d8   : > { %1153 = vpush %v715_v57  ;;  %v766_v6 = vadd.f32 %v765_v16, %v764_v43  ;;  %v777_v7 = vadd.f32 %v776_v45, %v775_v36  ;;  %v792_v43 = vld [vmem:[%s1912_s3] sm:$0x1] }
 0x1d9   : > { %1155 = vpush %v735_v63 }
 0x1da   : > { %1157 = vpush %v746_v2 }
 0x1db   : > { %1159 = vpush %v766_v6 }
 0x1dc   : > { %1161 = vpush %v777_v7 }
 0x200   : > { %s1148_s14 = spop %1147 }
 0x201   : > { %s686_s20 = smul.f32 0.00048828125, %s1148_s14 }
 0x203   : > { %v687_v29 = vstv %s686_s20 }
 0x204   : > { %v688_v3 = vsel %vm661_vm7, %v687_v29, 0.0 }
 0x207   : > { %s1150_s22 = spop %1149 }
 0x208   : > { %s689_s23 = smul.f32 0.00048828125, %s1150_s22  ;;  %s1152_s27 = spop %1151 }
 0x209   : > { %s717_s28 = smul.f32 0.00048828125, %s1152_s27  ;;  %s1154_s29 = spop %1153 }
 0x20a   : > { %v690_v13 = vstv %s689_s23  ;;  %s720_s30 = smul.f32 0.00048828125, %s1154_s29  ;;  %s1156_s5 = spop %1155 }
 0x20b   : > { %v691_v10 = vsel %vm661_vm7, %v690_v13, 0.0  ;;  %v718_v12 = vstv %s717_s28  ;;  %s748_s6 = smul.f32 0.00048828125, %s1156_s5  ;;  %s1158_s7 = spop %1157 }
 0x20c   : > { %v719_v14 = vsel %vm1698_vm6, %v718_v12, %v688_v3  ;;  %v721_v17 = vstv %s720_s30  ;;  %s751_s8 = smul.f32 0.00048828125, %s1158_s7  ;;  %s1160_s9 = spop %1159 }
 0x20d   : > { %v722_v18 = vsel %vm1698_vm6, %v721_v17, %v691_v10  ;;  %v749_v24 = vstv %s748_s6  ;;  %s779_s10 = smul.f32 0.00048828125, %s1160_s9  ;;  %s1162_s11 = spop %1161 }
 0x20e   : > { %v752_v26 = vstv %s751_s8  ;;  %s782_s12 = smul.f32 0.00048828125, %s1162_s11  ;;  %v750_v23 = vsel %vm1703_vm9, %v749_v24, %v719_v14  ;;  %s188_s23 = sand.u32 1, %s1314_s16  }
 0x20f   : > { %v753_v31 = vsel %vm1703_vm9, %v752_v26, %v722_v18  ;;  %v780_v32 = vstv %s779_s10  ;;  %s1041_s27 = sshll.u32 %s188_s23, 5  ;;  %s1078_s29 = sshll.u32 %s1373_s19, 9 }
 0x210   : > { %v781_v27 = vsel %vm1725_vm12, %v780_v32, %v750_v23  ;;  %v783_v38 = vstv %s782_s12  ;;  %s190_s28 = scalar_lea.vmem [#allocation2], %s1041_s27  ;;  %s1865_s7 = scalar_lea.hbm %s1913_s4, %s1078_s29 }
 0x211   : > { %v785_v40 = vmul.f32 %v781_v27, %v781_v27  ;;  %v784_v33 = vsel %vm1725_vm12, %v783_v38, %v753_v31  ;;  %s975_s30 = sshll.u32 %s190_s28, 4  ;;  %s1869_s8 = scalar_lea.sflag [#allocation3], %s188_s23  ;;  %s1867_s30 = int_to_ptr.vmem [resolvable:$true] %s975_s30 }
 0x212   : > { %s1262_s19 = scalar_lea.vmem %s1867_s30, 512  ;;  %s1324_s9 = smov [#allocation2]  }
 0x213   : > { %v786_v42 = vsub.f32 %v784_v33, %v785_v40  ;;  %p1263_p11 = scmp.ne.s32.totalorder %s1867_s30, %s1262_s19  ;;  %s1266_s10 = sshll.u32 %s1324_s9, 4  ;;  %s1267_s10 = int_to_ptr.vmem [resolvable:$false] %s1266_s10 }
 0x214   : > { %s1268_s11 = scalar_lea.vmem %s1267_s10, 1024  ;;  %p1269_p0 = scmp.lt.s32.totalorder %s1867_s30, %s1267_s10 }
 0x215   : > { %v787_v49 = vmax.f32 %v786_v42, 0.0  ;;  %p1264_p12 = pnand %p1263_p11, %p1390_p5  ;;  %p1270_p1 = scmp.lt.s32.totalorder %s1268_s11, %s1262_s19 }
 0x217   : > { %v788_v50 = vadd.f32 1e-05, %v787_v49  ;;  %p1265_p13 = pneg %p1264_p12  ;;  %p1271_p2 = por %p1270_p1, %p1269_p0 }
 0x219   : > { %1260 = vrsqrt.f32 %v788_v50  ;;  %p1272_p3 = pnand %p1271_p2, %p1265_p13 }
 0x226   : > { %v1261_v36 = vpop.eup %1260 }
 0x227   : > { %v791_v30 = vmul.f32 %v1261_v36, %v790_v60 }
 0x229   : > { %v793_v57 = vmul.f32 %v791_v30, %v781_v27  ;;  %v1760_v2 = vrot.slane %v791_v30, %v797_v48 }
 0x22b   : > { %v794_v0 = vsub.f32 %v792_v43, %v793_v57  ;;  %v799_v45 = vmul.f32 %v1760_v2, %v1471_v54  ;;  %v815_v63 = vmul.f32 %v1760_v2, %v1473_v55  ;;  %v800_v29 = vmul.f32 %v1760_v2, %v1479_v58 }
 0x22c   : > { %v816_v3 = vmul.f32 %v1760_v2, %v1501_v9  ;;  %v801_v54 = vmul.f32 %v1467_v52, %v1760_v2  ;;  %v817_v55 = vmul.f32 %v1469_v53, %v1760_v2  ;;  %v802_v18 = vmul.f32 %v1475_v56, %v1760_v2 }
 0x22d   : > { %v1762_v16 = vrot.slane %v794_v0, %v797_v48  ;;  %v818_v9 = vmul.f32 %v1481_v59, %v1760_v2  ;;  %v803_v53 = vmul.f32 %v1760_v2, %v1499_v8  ;;  %v819_v23 = vmul.f32 %v1760_v2, %v1533_v35 }
 0x22e   : > { %v804_v59 = vmul.f32 %v1760_v2, %v1513_v20  ;;  %v820_v27 = vmul.f32 %v1760_v2, %v1565_v5  ;;  %v805_v35 = vmul.f32 %v1491_v1, %v1760_v2  ;;  %v821_v33 = vmul.f32 %v1515_v21, %v1760_v2 }
 0x22f   : > { %v837_v6 = vadd.f32 %v1762_v16, %v799_v45  ;;  %v853_v7 = vadd.f32 %v1762_v16, %v815_v63  ;;  %v838_v10 = vadd.f32 %v1762_v16, %v800_v29  ;;  %v854_v12 = vadd.f32 %v1762_v16, %v816_v3 }
 0x230   : > { %v839_v14 = vadd.f32 %v1762_v16, %v801_v54  ;;  %v855_v17 = vadd.f32 %v1762_v16, %v817_v55  ;;  %v840_v24 = vadd.f32 %v1762_v16, %v802_v18  ;;  %v856_v26 = vadd.f32 %v1762_v16, %v818_v9 }
 0x231   : > { %v1204_v13 = vpack.i.bf16 %v853_v7, %v837_v6  ;;  %v1206_v58 = vpack.i.bf16 %v854_v12, %v838_v10  ;;  %v841_v31 = vadd.f32 %v1762_v16, %v803_v53  ;;  %v857_v56 = vadd.f32 %v1762_v16, %v819_v23 }
 0x232   : > { %v1208_v52 = vpack.i.bf16 %v855_v17, %v839_v14  ;;  %v1210_v32 = vpack.i.bf16 %v856_v26, %v840_v24  ;;  %v842_v38 = vadd.f32 %v1762_v16, %v804_v59  ;;  %v858_v8 = vadd.f32 %v1762_v16, %v820_v27  ;;  %v1930_v14 = vld [vmem:[#allocation6_spill] sm:$0xff]  ;;  %v1932_v24 = vld [vmem:[#allocation7_spill] sm:$0xff] }
 0x233   : > { %1205 = vxpose.xlu0.b32.start [1/16] (narrow) %v1204_v13, 32  ;;  %v1212_v40 = vpack.i.bf16 %v857_v56, %v841_v31  ;;  %v843_v42 = vadd.f32 %v1762_v16, %v805_v35  ;;  %v859_v20 = vadd.f32 %v1762_v16, %v821_v33  ;;  %v806_v5 = vmul.f32 %v1508_v15, %v1760_v2 }
 0x234   : > { %v1214_v49 = vpack.i.bf16 %v858_v8, %v842_v38  ;;  %v822_v50 = vmul.f32 %v1547_v47, %v1760_v2  ;;  %v807_v21 = vmul.f32 %v1760_v2, %v1531_v34  ;;  %v823_v39 = vmul.f32 %v1760_v2, %v1593_v37 }
 0x235   : > { %v844_v60 = vadd.f32 %v1762_v16, %v806_v5  ;;  %v1216_v62 = vpack.i.bf16 %v859_v20, %v843_v42  ;;  %v808_v47 = vmul.f32 %v1760_v2, %v1545_v46  ;;  %v824_v43 = vmul.f32 %v1760_v2, %v1617_v11 }
 0x236   : > { %v860_v1 = vadd.f32 %v1762_v16, %v822_v50  ;;  %v845_v36 = vadd.f32 %v1762_v16, %v807_v21  ;;  %v861_v15 = vadd.f32 %v1762_v16, %v823_v39  ;;  %v809_v37 = vmul.f32 %v1524_v28, %v1760_v2 }
 0x237   : > { %1207 = vxpose.xlu0.b32.cont [2/16] (narrow) %v1206_v58, 32  ;;  %v846_v48 = vadd.f32 %v1762_v16, %v808_v47  ;;  %v862_v34 = vadd.f32 %v1762_v16, %v824_v43  ;;  %v825_v0 = vmul.f32 %v1579_v22, %v1760_v2  ;;  %v810_v11 = vmul.f32 %v1540_v41, %v1760_v2 }
 0x238   : > { %v1218_v30 = vpack.i.bf16 %v860_v1, %v844_v60  ;;  %v1220_v57 = vpack.i.bf16 %v861_v15, %v845_v36  ;;  %v847_v45 = vadd.f32 %v1762_v16, %v809_v37  ;;  %v826_v6 = vmul.f32 %v1605_v51, %v1760_v2 }
 0x239   : > { %v863_v46 = vadd.f32 %v1762_v16, %v825_v0  ;;  %v1222_v63 = vpack.i.bf16 %v862_v34, %v846_v48  ;;  %v848_v7 = vadd.f32 %v1762_v16, %v810_v11  ;;  %v811_v22 = vmul.f32 %v1760_v2, %v1563_v4 }
 0x23a   : > { %v864_v28 = vadd.f32 %v1762_v16, %v826_v6  ;;  %v827_v13 = vmul.f32 %v1760_v2, %v1641_v44  ;;  %v812_v51 = vmul.f32 %v1760_v2, %v1577_v19  ;;  %v828_v12 = vmul.f32 %v1760_v2, %v1665_v25  ;;  %v1931_v25 = vld [vmem:[#allocation5_spill] sm:$0xff] }
 0x23b   : > { %1209 = vxpose.xlu0.b32.cont [3/16] (narrow) %v1208_v52, 32  ;;  %v1224_v29 = vpack.i.bf16 %v863_v46, %v847_v45  ;;  %v849_v3 = vadd.f32 %v1762_v16, %v811_v22  ;;  %v813_v44 = vmul.f32 %v1556_v61, %v1760_v2  ;;  %v829_v17 = vmul.f32 %v1930_v14, %v1760_v2 }
 0x23c   : > { %v865_v41 = vadd.f32 %v1762_v16, %v827_v13  ;;  %v1226_v10 = vpack.i.bf16 %v864_v28, %v848_v7  ;;  %v850_v54 = vadd.f32 %v1762_v16, %v812_v51  ;;  %v866_v4 = vadd.f32 %v1762_v16, %v828_v12 }
 0x23d   : > { %v851_v58 = vadd.f32 %v1762_v16, %v813_v44  ;;  %v867_v19 = vadd.f32 %v1762_v16, %v829_v17  ;;  %v814_v9 = vmul.f32 %v1931_v25, %v1760_v2  ;;  %v830_v26 = vmul.f32 %v1932_v24, %v1760_v2 }
 0x23e   : > { %v1228_v55 = vpack.i.bf16 %v865_v41, %v849_v3  ;;  %v1230_v18 = vpack.i.bf16 %v866_v4, %v850_v54 }
 0x23f   : > { %1211 = vxpose.xlu0.b32.cont [4/16] (narrow) %v1210_v32, 32  ;;  %v852_v52 = vadd.f32 %v1762_v16, %v814_v9  ;;  %v868_v61 = vadd.f32 %v1762_v16, %v830_v26  ;;  %v1232_v53 = vpack.i.bf16 %v867_v19, %v851_v58 }
 0x241   : > { %v1234_v23 = vpack.i.bf16 %v868_v61, %v852_v52 }
 0x243   : > { %1213 = vxpose.xlu0.b32.cont [5/16] (narrow) %v1212_v40, 32 }
 0x247   : > { %1215 = vxpose.xlu0.b32.cont [6/16] (narrow) %v1214_v49, 32 }
 0x24b   : > { %1217 = vxpose.xlu0.b32.cont [7/16] (narrow) %v1216_v62, 32 }
 0x24f   : > { %1219 = vxpose.xlu0.b32.cont [8/16] (narrow) %v1218_v30, 32 }
 0x253   : > { %1221 = vxpose.xlu0.b32.cont [9/16] (narrow) %v1220_v57, 32 }
 0x257   : > { %1223 = vxpose.xlu0.b32.cont [10/16] (narrow) %v1222_v63, 32 }
 0x25b   : > { %1225 = vxpose.xlu0.b32.cont [11/16] (narrow) %v1224_v29, 32 }
 0x25f   : > { %1227 = vxpose.xlu0.b32.cont [12/16] (narrow) %v1226_v10, 32 }
 0x263   : > { %1229 = vxpose.xlu0.b32.cont [13/16] (narrow) %v1228_v55, 32 }
 0x267   : > { %1231 = vxpose.xlu0.b32.cont [14/16] (narrow) %v1230_v18, 32 }
 0x26b   : > { %1233 = vxpose.xlu0.b32.cont [15/16] (narrow) %v1232_v53, 32 }
 0x26f   : > { %1235 = vxpose.xlu0.b32.end [16/16] (narrow) %v1234_v23, 32 }
 0x2af   : > { %v1236_v31 = vpop.trf.xlu0 }
 0x2b0   : > { %v1240_v56 = vunpack.i.h.bf16 %v1236_v31  ;;  %v1237_v32 = vunpack.i.l.bf16 %v1236_v31 }
 0x2b2   : > { %v1074_v59 = vpack.c.bf16 %v1240_v56, %v1237_v32 }
 0x2b3   : > { %v1241_v27 = vpop.trf.xlu0 }
 0x2b4   : > { %957 = vst [vmem:[%s190_s28] sm:$0xff] %v1074_v59  ;;  %v1245_v2 = vunpack.i.h.bf16 %v1241_v27  ;;  %v1242_v38 = vunpack.i.l.bf16 %v1241_v27 }
 0x2b6   : > { %v1075_v8 = vpack.c.bf16 %v1245_v2, %v1242_v38 }
 0x2b7   : > { %v1246_v40 = vpop.trf.xlu0 }
 0x2b8   : > { %958 = vst [vmem:[%s190_s28 + $0x8] sm:$0xff] %v1075_v8  ;;  %v1250_v16 = vunpack.i.h.bf16 %v1246_v40  ;;  %v1247_v35 = vunpack.i.l.bf16 %v1246_v40 }
 0x2ba   : > { %v1076_v33 = vpack.c.bf16 %v1250_v16, %v1247_v35 }
 0x2bb   : > { %v1251_v42 = vpop.trf.xlu0 }
 0x2bc   : > { %959 = vst [vmem:[%s190_s28 + $0x10] sm:$0xff] %v1076_v33  ;;  %v1255_v20 = vunpack.i.h.bf16 %v1251_v42  ;;  %v1252_v49 = vunpack.i.l.bf16 %v1251_v42 }
 0x2be   : > { %v1077_v5 = vpack.c.bf16 %v1255_v20, %v1252_v49 }
 0x2c0   : > { %960 = vst [vmem:[%s190_s28 + $0x18] sm:$0xff] %v1077_v5 }
 0x2c1   : > { %1275 = shalt.err (!%p1272_p3)
}
 0x2c2   : > { %s1276_s12 = scalar_lea.hbm %s1865_s7, 512  ;;  %s1280_s20 = scalar_lea.hbm %s1913_s4, 1024 }
 0x2c3   : > { %p1277_p4 = scmp.ne.s32.totalorder %s1865_s7, %s1276_s12  ;;  %p1281_p9 = scmp.lt.s32.totalorder %s1865_s7, %s1913_s4 }
 0x2c4   : > { %p1282_p10 = scmp.lt.s32.totalorder %s1280_s20, %s1276_s12 }
 0x2c5   : > { %p1278_p7 = pnand %p1277_p4, %p1390_p5 }
 0x2c6   : > { %p1283_p11 = por %p1282_p10, %p1281_p9 }
 0x2c7   : > { %p1279_p8 = pneg %p1278_p7 }
 0x2c9   : > { %p1284_p12 = pnand %p1283_p11, %p1279_p8 }
 0x2cb   : > { %1287 = shalt.err (!%p1284_p12)
}
 0x2cc   : > { %s1325_s27 = smov 128   ;;  %s1326_s28 = smov 8  }
 0x2cd   : > { %1163 = dma.vmem_to_hbm [thread:$0]  (%p1390_p5), %s1867_s30, 512, %s1865_s7, %s1869_s8, %s1325_s27, %s1325_s27, %s1326_s28  }
 0x2ce PF: > { %p1169_p13 = scmp.ge.s32.totalorder %s1322_s18, 2  ;;  %s990_s29 = sand.u32 1, %s1310_s15  }
 0x2cf   : > { %s991_s5 = scalar_lea.sflag [#allocation3], %s990_s29 }
 0x2d0   : > { %p1166_p0 = pnand %p1169_p13, %p1394_p6 }
 0x2d2   : > { %p1167_p1 = pneg %p1166_p0 }
 0x2d4   : > { %1305 = dma.done.wait (%p1167_p1), %s991_s5, 512  }
 0x2d5   : > { %1307 = vsyncadd (%p1167_p1), %s991_s5, 4294966784  ;;  %p14_p2 = scmp.ge.s32.totalorder %s1377_s21, 4   ;;  %s1933_s15 = smov %s1314_s16 }
 0x2d6   : > { %s1934_s16 = smov %s1318_s17  ;;  %s1935_s17 = smov %s1388_s24 }
 0x2d7   : > { %s1936_s18 = smov %s1377_s21  ;;  %16 = sbr.rel (!%p14_p2) target bundleno = 3 (0x3), region = 71 }
 0x2dc   :  { %996 = vsyncpa [#allocation3], 1 }
 0x2dd   :  { %998 = vsyncpa [#allocation3 + $0x1], 1 }

</bundles_post_ra>
